<compile_context>
chip_gen: v7x
topology: tpu7x:2x2x1
jax: 0.10.0
libtpu: 0.0.40
codegen_flags: <defaults>
</compile_context>

<pallas_src>
import functools

import jax
import jax.numpy as jnp
from jax.experimental import pallas as pl
from jax.experimental.pallas import tpu as pltpu

# TODO(synk): the reference `Dice` class is not shown; this implements the
# canonical DIN Dice (nn.BatchNorm1d-style TRAINING-mode statistics: biased
# variance over the forward batch, eps=1e-8, per-feature alpha init to 0).
# Swap in running statistics here if the torch module runs in eval mode.
_DICE_EPS = 1e-8

_VMEM_LIMIT_CAP = 60 * 1024 * 1024     # stay under v7x 64 MiB physical VMEM
_VMEM_LIMIT_FLOOR = 32 * 1024 * 1024


def _round_up(x, m):
    return (x + m - 1) // m * m


def _vmem_limit(estimate_bytes):
    return int(min(_VMEM_LIMIT_CAP,
                   max(_VMEM_LIMIT_FLOOR, int(estimate_bytes * 1.5))))


def _linear_part(h, c, w1h_ref, w1p_ref, w1c_ref, b1_ref):
    """lin = [h, h*c, c] @ W1 + b1 with W1 split row-wise (no lane concat)."""
    prod = h * c
    return (jnp.dot(h, w1h_ref[...], preferred_element_type=jnp.float32)
            + jnp.dot(prod, w1p_ref[...], preferred_element_type=jnp.float32)
            + jnp.dot(c, w1c_ref[...], preferred_element_type=jnp.float32)
            + b1_ref[...])


# --------------------------- fused single-call path ---------------------------

def _fused_kernel(h_ref, c_ref, w1h_ref, w1p_ref, w1c_ref, b1_ref,
                  alpha_ref, w2_ref, b2_ref, out_ref, *, batch):
    h = h_ref[...].astype(jnp.float32)
    c = c_ref[...].astype(jnp.float32)
    lin = _linear_part(h, c, w1h_ref, w1p_ref, w1c_ref, b1_ref)      # (B, L)

    inv_b = 1.0 / batch
    mean = jnp.sum(lin, axis=0, keepdims=True) * inv_b
    centered = lin - mean
    var = jnp.sum(centered * centered, axis=0, keepdims=True) * inv_b
    rstd = jax.lax.rsqrt(var + _DICE_EPS)

    p = jax.nn.sigmoid(centered * rstd)
    # Folded Dice mix: p*lin + alpha*(1-p)*lin == lin * (p + alpha*(1-p)).
    act = lin * (p + alpha_ref[...] * (1.0 - p))

    logits = jnp.sum(act * w2_ref[...], axis=-1) + b2_ref[0, 0]      # (B,)
    out_ref[...] = logits.reshape(out_ref.shape)


# -------------------------- two-pass fallback kernels --------------------------

def _stats_kernel(h_ref, c_ref, w1h_ref, w1p_ref, w1c_ref, b1_ref, stats_ref,
                  *, batch, tile_rows, tiles_per_shard):
    """Per-shard shifted sum / sum-of-squares of `lin` (rows: shift, S, Q)."""
    s = pl.program_id(0)               # shard: "parallel" (one per TC on v7x)
    i = pl.program_id(1)               # tile within shard: "arbitrary"
    global_tile = s * tiles_per_shard + i

    h = h_ref[...].astype(jnp.float32)
    c = c_ref[...].astype(jnp.float32)
    lin = _linear_part(h, c, w1h_ref, w1p_ref, w1c_ref, b1_ref)

    # Mask rows past the true batch size (partial / clamped tiles).
    row_ids = jax.lax.broadcasted_iota(jnp.int32, lin.shape, 0)
    valid = row_ids < (batch - global_tile * tile_rows)

    @pl.when(i == 0)
    def _init():
        # Shift = first tile's per-feature mean (numerically stable one-pass
        # variance); shard start is always < batch by construction.
        count0 = jnp.minimum(batch - s * tiles_per_shard * tile_rows,
                             tile_rows).astype(jnp.float32)
        lin0 = jnp.where(valid, lin, 0.0)
        shift0 = jnp.sum(lin0, axis=0, keepdims=True) / count0
        stats_ref[0:1, :] = shift0
        stats_ref[1:2, :] = jnp.zeros_like(shift0)
        stats_ref[2:3, :] = jnp.zeros_like(shift0)

    shift = stats_ref[0:1, :]
    centered = jnp.where(valid, lin - shift, 0.0)
    stats_ref[1:2, :] += jnp.sum(centered, axis=0, keepdims=True)
    stats_ref[2:3, :] += jnp.sum(centered * centered, axis=0, keepdims=True)


def _apply_kernel(stats_ref, h_ref, c_ref, w1h_ref, w1p_ref, w1c_ref, b1_ref,
                  alpha_ref, w2_ref, b2_ref, out_ref):
    h = h_ref[...].astype(jnp.float32)
    c = c_ref[...].astype(jnp.float32)
    lin = _linear_part(h, c, w1h_ref, w1p_ref, w1c_ref, b1_ref)

    mean = stats_ref[0:1, :]
    rstd = stats_ref[1:2, :]
    p = jax.nn.sigmoid((lin - mean) * rstd)
    act = lin * (p + alpha_ref[...] * (1.0 - p))                     # (TB, L)

    # Final projection on the VPU; lane-dense (1, 1, TB) output block.
    logits = jnp.sum(act * w2_ref[...], axis=-1) + b2_ref[0, 0]      # (TB,)
    out_ref[...] = logits.reshape(out_ref.shape)


# ----------------------------------- wrapper -----------------------------------

def activation_unit(history, candidate, params, *, block_rows=4096,
                    fused_vmem_budget=36 * 1024 * 1024):
    """DIN ActivationUnit forward: history/candidate [B, D] -> logits [B, 1]."""
    B, D = history.shape
    L = params["b1"].shape[-1]
    itemsize = jnp.dtype(history.dtype).itemsize

    # Weights stay f32 (precision of the Dice statistics). Inputs are carried
    # in their native HBM dtype -- no wrapper-side cast (it would be an extra
    # full HBM read+write pass before the kernels even start).
    w1h = params["w1h"].astype(jnp.float32)
    w1p = params["w1p"].astype(jnp.float32)
    w1c = params["w1c"].astype(jnp.float32)
    b1 = params["b1"].reshape(1, L).astype(jnp.float32)
    alpha = jnp.broadcast_to(params["alpha"].astype(jnp.float32), (1, L))
    w2_row = params["w2"].reshape(1, L).astype(jnp.float32)
    b2 = params["b2"].reshape(1, 1).astype(jnp.float32)

    l_pad = _round_up(L, 128)
    weights_bytes = (3 * D + 4) * l_pad * 4

    # ---------------- fused single-call fast path ----------------
    fused_bytes = 2 * B * D * itemsize + 6 * B * l_pad * 4 + weights_bytes
    if fused_bytes <= fused_vmem_budget:
        vmem_spec = pl.BlockSpec(memory_space=pltpu.MemorySpace.VMEM)
        out = pl.pallas_call(
            functools.partial(_fused_kernel, batch=B),
            out_shape=jax.ShapeDtypeStruct((1, B), jnp.float32),
            in_specs=[vmem_spec] * 8
                     + [pl.BlockSpec(memory_space=pltpu.MemorySpace.SMEM)],
            out_specs=vmem_spec,
            compiler_params=pltpu.CompilerParams(
                vmem_limit_bytes=_vmem_limit(fused_bytes)),
        )(history, candidate, w1h, w1p, w1c, b1, alpha, w2_row, b2)
        return out.reshape(B, 1)

    # ---------------- large-batch two-pass fallback ----------------
    TB = min(_round_up(block_rows, 8), _round_up(B, 8))
    num_tiles = pl.cdiv(B, TB)
    num_shards = 2 if num_tiles >= 2 else 1          # 2 TensorCores on v7x
    tiles_per_shard = pl.cdiv(num_tiles, num_shards)

    stats_bytes = (2 * 2 * TB * D * itemsize + 4 * TB * l_pad * 4
                   + weights_bytes)
    apply_bytes = (2 * 2 * TB * D * itemsize + 6 * TB * l_pad * 4
                   + weights_bytes + 2 * TB * 4)

    # Pass 1: per-shard shifted sum / sumsq (cross-tile resident accumulator).
    row_spec_s = pl.BlockSpec(
        (TB, D),
        lambda s, i: (jnp.minimum(s * tiles_per_shard + i, num_tiles - 1), 0))
    w1_spec_s = pl.BlockSpec((D, L), lambda s, i: (0, 0))
    vecL_spec_s = pl.BlockSpec((1, L), lambda s, i: (0, 0))

    parts = pl.pallas_call(
        functools.partial(_stats_kernel, batch=B, tile_rows=TB,
                          tiles_per_shard=tiles_per_shard),
        out_shape=jax.ShapeDtypeStruct((num_shards, 3, L), jnp.float32),
        grid=(num_shards, tiles_per_shard),
        in_specs=[row_spec_s, row_spec_s, w1_spec_s, w1_spec_s, w1_spec_s,
                  vecL_spec_s],
        out_specs=pl.BlockSpec((pl.Squeezed(), 3, L), lambda s, i: (s, 0, 0)),
        compiler_params=pltpu.CompilerParams(
            dimension_semantics=("parallel", "arbitrary"),
            vmem_limit_bytes=_vmem_limit(stats_bytes)),
    )(history, candidate, w1h, w1p, w1c, b1)

    # Combine per-shard partials into full-batch (mean, rstd): tiny (S, L)
    # arrays merged with Chan's parallel-variance formula in plain JAX.
    rows_per_shard = tiles_per_shard * TB
    n_s = jnp.clip(
        B - jnp.arange(num_shards, dtype=jnp.float32) * rows_per_shard,
        1.0, float(rows_per_shard))[:, None]
    shift = parts[:, 0, :]
    s1 = parts[:, 1, :]
    s2 = parts[:, 2, :]
    mean_s = shift + s1 / n_s
    m2_s = s2 - (s1 * s1) / n_s
    mean = jnp.sum(n_s * mean_s, axis=0, keepdims=True) / B
    m2 = (jnp.sum(m2_s, axis=0, keepdims=True)
          + jnp.sum(n_s * jnp.square(mean_s - mean), axis=0, keepdims=True))
    var = m2 / B                                   # biased (BatchNorm1d training)
    rstd = jax.lax.rsqrt(jnp.maximum(var, 0.0) + _DICE_EPS)
    stats = jnp.concatenate([mean, rstd], axis=0)  # (2, L)

    # Pass 2: gate + projection (independent tiles -> megacore-parallel).
    row_spec_a = pl.BlockSpec((TB, D), lambda i: (i, 0))
    w1_spec_a = pl.BlockSpec((D, L), lambda i: (0, 0))
    vecL_spec_a = pl.BlockSpec((1, L), lambda i: (0, 0))

    out = pl.pallas_call(
        _apply_kernel,
        out_shape=jax.ShapeDtypeStruct((num_tiles, 1, TB), jnp.float32),
        grid=(num_tiles,),
        in_specs=[
            pl.BlockSpec((2, L), lambda i: (0, 0)),              # mean/rstd
            row_spec_a, row_spec_a,                              # history, cand
            w1_spec_a, w1_spec_a, w1_spec_a, vecL_spec_a,        # W1 split + b1
            vecL_spec_a,                                         # alpha (1, L)
            vecL_spec_a,                                         # w2 row vector
            pl.BlockSpec(memory_space=pltpu.MemorySpace.SMEM),   # b2 scalar
        ],
        out_specs=pl.BlockSpec((1, 1, TB), lambda i: (i, 0, 0)),
        compiler_params=pltpu.CompilerParams(
            dimension_semantics=("parallel",),
            vmem_limit_bytes=_vmem_limit(apply_bytes)),
    )(stats, history, candidate, w1h, w1p, w1c, b1, alpha, w2_row, b2)

    return out.reshape(num_tiles * TB)[:B].reshape(B, 1)


def init_params(key, g_emb_dim, linear_dim=36):
    """Matches torch.nn.Linear default init (uniform +/- 1/sqrt(fan_in));
    Dice alpha is per-feature and initialized to 0 (canonical DIN)."""
    k1, k2, k3, k4 = jax.random.split(key, 4)
    fan_in1 = 3 * g_emb_dim
    b1_bound = 1.0 / (fan_in1 ** 0.5)
    w1 = jax.random.uniform(k1, (fan_in1, linear_dim), jnp.float32,
                            -b1_bound, b1_bound)
    b1 = jax.random.uniform(k2, (1, linear_dim), jnp.float32,
                            -b1_bound, b1_bound)
    b2_bound = 1.0 / (linear_dim ** 0.5)
    w2 = jax.random.uniform(k3, (linear_dim, 1), jnp.float32, -b2_bound, b2_bound)
    b2 = jax.random.uniform(k4, (1, 1), jnp.float32, -b2_bound, b2_bound)
    alpha = jnp.zeros((1, linear_dim), jnp.float32)
    return dict(
        w1h=w1[:g_emb_dim],
        w1p=w1[g_emb_dim:2 * g_emb_dim],
        w1c=w1[2 * g_emb_dim:],
        b1=b1, alpha=alpha, w2=w2, b2=b2,
    )


def reference_forward(history, candidate, params):
    """Pure-JAX reference of the same math (biased batch-norm variance)."""
    prod = history * candidate
    lin = (history @ params["w1h"] + prod @ params["w1p"]
           + candidate @ params["w1c"] + params["b1"])
    mean = jnp.mean(lin, axis=0, keepdims=True)
    var = jnp.mean((lin - mean) ** 2, axis=0, keepdims=True)
    p = jax.nn.sigmoid((lin - mean) * jax.lax.rsqrt(var + _DICE_EPS))
    act = lin * (p + params["alpha"] * (1.0 - p))
    return act @ params["w2"] + params["b2"]


if __name__ == "__main__":
    G_EMB, LINEAR = 32, 36
    key = jax.random.PRNGKey(0)
    k_h, k_c, k_p = jax.random.split(key, 3)
    params = init_params(k_p, G_EMB, LINEAR)

    # (1) Small batch -> fused single-call path.
    B = 8
    history = jax.random.normal(k_h, (B, G_EMB), jnp.float32)
    candidate = jax.random.normal(k_c, (B, G_EMB), jnp.float32)
    out = jax.block_until_ready(activation_unit(history, candidate, params))
    ref = reference_forward(history, candidate, params)
    assert out.shape == (B, 1)
    assert jnp.allclose(out, ref, atol=1e-4, rtol=1e-4), "fused path mismatch"

    # (2) Fused path with a batch that is not a multiple of 8.
    B2 = 20
    h2 = jax.random.normal(jax.random.PRNGKey(1), (B2, G_EMB), jnp.float32)
    c2 = jax.random.normal(jax.random.PRNGKey(2), (B2, G_EMB), jnp.float32)
    out2 = jax.block_until_ready(activation_unit(h2, c2, params))
    ref2 = reference_forward(h2, c2, params)
    assert out2.shape == (B2, 1)
    assert jnp.allclose(out2, ref2, atol=1e-4, rtol=1e-4), "fused B=20 mismatch"

    # (3) Force the large-batch two-pass path at a small shape: multi-tile,
    #     partial last tile, 2-way sharded stats + wrapper combine.
    out3 = jax.block_until_ready(
        activation_unit(h2, c2, params, block_rows=8, fused_vmem_budget=0))
    assert out3.shape == (B2, 1)
    assert jnp.allclose(out3, ref2, atol=1e-4, rtol=1e-4), "two-pass mismatch"

    print("KERNEL_OK")
</pallas_src>

<mosaic_0001>
module attributes {stable_mosaic.version = 11 : i64} {
  func.func @_fused_kernel(%arg0: memref<8x32xf32, #tpu.memory_space<vmem>>, %arg1: memref<8x32xf32, #tpu.memory_space<vmem>>, %arg2: memref<32x36xf32, #tpu.memory_space<vmem>>, %arg3: memref<32x36xf32, #tpu.memory_space<vmem>>, %arg4: memref<32x36xf32, #tpu.memory_space<vmem>>, %arg5: memref<1x36xf32, #tpu.memory_space<vmem>>, %arg6: memref<1x36xf32, #tpu.memory_space<vmem>>, %arg7: memref<1x36xf32, #tpu.memory_space<vmem>>, %arg8: memref<1x1xf32, #tpu.memory_space<smem>>, %arg9: memref<1x8xf32, #tpu.memory_space<vmem>>) attributes {dimension_semantics = [], scalar_prefetch = 0 : i64, scratch_operands = 0 : i64, tpu.core_type = #tpu.core_type<tc>} {
    %c0 = arith.constant 0 : index
    %c0_0 = arith.constant 0 : index
    %0 = vector.load %arg0[%c0, %c0_0] : memref<8x32xf32, #tpu.memory_space<vmem>>, vector<8x32xf32>
    %c0_1 = arith.constant 0 : index
    %c0_2 = arith.constant 0 : index
    %1 = vector.load %arg1[%c0_1, %c0_2] : memref<8x32xf32, #tpu.memory_space<vmem>>, vector<8x32xf32>
    %2 = arith.mulf %0, %1 : vector<8x32xf32>
    %c0_3 = arith.constant 0 : index
    %c0_4 = arith.constant 0 : index
    %3 = vector.load %arg2[%c0_3, %c0_4] : memref<32x36xf32, #tpu.memory_space<vmem>>, vector<32x36xf32>
    %cst = arith.constant dense<0.000000e+00> : vector<8x36xf32>
    %4 = tpu.matmul %0, %3, %cst {dimension_numbers = #tpu.dot_dimension_numbers<[1], [0], [0], [1], [0, 0, 1, 1], [], []>} : vector<8x32xf32>, vector<32x36xf32>, vector<8x36xf32> -> vector<8x36xf32>
    %c0_5 = arith.constant 0 : index
    %c0_6 = arith.constant 0 : index
    %5 = vector.load %arg3[%c0_5, %c0_6] : memref<32x36xf32, #tpu.memory_space<vmem>>, vector<32x36xf32>
    %cst_7 = arith.constant dense<0.000000e+00> : vector<8x36xf32>
    %6 = tpu.matmul %2, %5, %cst_7 {dimension_numbers = #tpu.dot_dimension_numbers<[1], [0], [0], [1], [0, 0, 1, 1], [], []>} : vector<8x32xf32>, vector<32x36xf32>, vector<8x36xf32> -> vector<8x36xf32>
    %7 = arith.addf %4, %6 : vector<8x36xf32>
    %c0_8 = arith.constant 0 : index
    %c0_9 = arith.constant 0 : index
    %8 = vector.load %arg4[%c0_8, %c0_9] : memref<32x36xf32, #tpu.memory_space<vmem>>, vector<32x36xf32>
    %cst_10 = arith.constant dense<0.000000e+00> : vector<8x36xf32>
    %9 = tpu.matmul %1, %8, %cst_10 {dimension_numbers = #tpu.dot_dimension_numbers<[1], [0], [0], [1], [0, 0, 1, 1], [], []>} : vector<8x32xf32>, vector<32x36xf32>, vector<8x36xf32> -> vector<8x36xf32>
    %10 = arith.addf %7, %9 : vector<8x36xf32>
    %c0_11 = arith.constant 0 : index
    %c0_12 = arith.constant 0 : index
    %11 = vector.load %arg5[%c0_11, %c0_12] : memref<1x36xf32, #tpu.memory_space<vmem>>, vector<1x36xf32>
    %12 = vector.broadcast %11 : vector<1x36xf32> to vector<8x36xf32>
    %13 = arith.addf %10, %12 : vector<8x36xf32>
    %cst_13 = arith.constant dense<0.000000e+00> : vector<36xf32>
    %14 = vector.multi_reduction <add>, %13, %cst_13 [0] : vector<8x36xf32> to vector<36xf32>
    %15 = vector.shape_cast %14 : vector<36xf32> to vector<1x36xf32>
    %cst_14 = arith.constant 1.250000e-01 : f32
    %16 = vector.broadcast %cst_14 : f32 to vector<1x36xf32>
    %17 = arith.mulf %15, %16 : vector<1x36xf32>
    %18 = vector.broadcast %17 : vector<1x36xf32> to vector<8x36xf32>
    %19 = arith.subf %13, %18 : vector<8x36xf32>
    %20 = arith.mulf %19, %19 : vector<8x36xf32>
    %cst_15 = arith.constant dense<0.000000e+00> : vector<36xf32>
    %21 = vector.multi_reduction <add>, %20, %cst_15 [0] : vector<8x36xf32> to vector<36xf32>
    %22 = vector.shape_cast %21 : vector<36xf32> to vector<1x36xf32>
    %cst_16 = arith.constant 1.250000e-01 : f32
    %23 = vector.broadcast %cst_16 : f32 to vector<1x36xf32>
    %24 = arith.mulf %22, %23 : vector<1x36xf32>
    %cst_17 = arith.constant 9.99999993E-9 : f32
    %25 = vector.broadcast %cst_17 : f32 to vector<1x36xf32>
    %26 = arith.addf %24, %25 : vector<1x36xf32>
    %27 = math.rsqrt %26 : vector<1x36xf32>
    %28 = vector.broadcast %27 : vector<1x36xf32> to vector<8x36xf32>
    %29 = arith.mulf %19, %28 : vector<8x36xf32>
    %30 = arith.negf %29 : vector<8x36xf32>
    %31 = math.exp %30 : vector<8x36xf32>
    %cst_18 = arith.constant 1.000000e+00 : f32
    %32 = vector.broadcast %cst_18 : f32 to vector<8x36xf32>
    %33 = arith.addf %32, %31 : vector<8x36xf32>
    %34 = arith.divf %32, %33 : vector<8x36xf32>
    %c0_19 = arith.constant 0 : index
    %c0_20 = arith.constant 0 : index
    %35 = vector.load %arg6[%c0_19, %c0_20] : memref<1x36xf32, #tpu.memory_space<vmem>>, vector<1x36xf32>
    %cst_21 = arith.constant 1.000000e+00 : f32
    %36 = vector.broadcast %cst_21 : f32 to vector<8x36xf32>
    %37 = arith.subf %36, %34 : vector<8x36xf32>
    %38 = vector.broadcast %35 : vector<1x36xf32> to vector<8x36xf32>
    %39 = arith.mulf %38, %37 : vector<8x36xf32>
    %40 = arith.addf %34, %39 : vector<8x36xf32>
    %41 = arith.mulf %13, %40 : vector<8x36xf32>
    %c0_22 = arith.constant 0 : index
    %c0_23 = arith.constant 0 : index
    %42 = vector.load %arg7[%c0_22, %c0_23] : memref<1x36xf32, #tpu.memory_space<vmem>>, vector<1x36xf32>
    %43 = vector.broadcast %42 : vector<1x36xf32> to vector<8x36xf32>
    %44 = arith.mulf %41, %43 : vector<8x36xf32>
    %cst_24 = arith.constant dense<0.000000e+00> : vector<8xf32>
    %45 = vector.multi_reduction <add>, %44, %cst_24 [1] : vector<8x36xf32> to vector<8xf32>
    %c0_25 = arith.constant 0 : index
    %c0_26 = arith.constant 0 : index
    %46 = memref.load %arg8[%c0_25, %c0_26] : memref<1x1xf32, #tpu.memory_space<smem>>
    %47 = vector.broadcast %46 : f32 to vector<8xf32>
    %48 = arith.addf %45, %47 : vector<8xf32>
    %49 = vector.shape_cast %48 : vector<8xf32> to vector<1x8xf32>
    %c0_27 = arith.constant 0 : index
    %c0_28 = arith.constant 0 : index
    %50 = vector.load %arg9[%c0_27, %c0_28] : memref<1x8xf32, #tpu.memory_space<vmem>>, vector<1x8xf32>
    tpu.vector_store %arg9[%c0_27, %c0_28], %49 {strides = array<i32>} : memref<1x8xf32, #tpu.memory_space<vmem>>, vector<1x8xf32>,
    return
  }
}

</mosaic_0001>

<bundles_post_ra>
// kernel: tpu_custom_call.1
= control target key start
LH: loop header
LB: loop body
LE: loop exit
PB: predicated region body
PF: predicated region fallthrough
CT: control target
= control target key end

     0   :  { %15 = vsyncpa [#allocation4], 0  ;;  %s812_s0 = inlined_call_operand.hbm [shape: f32[8,32], index: 0, kind: input, shape index: {}]   ;;  %s813_s1 = inlined_call_operand.hbm [shape: f32[8,32], index: 1, kind: input, shape index: {}]   ;;  %s814_s2 = inlined_call_operand.hbm [shape: f32[32,36], index: 2, kind: input, shape index: {}]   ;;  %s815_s3 = inlined_call_operand.hbm [shape: f32[32,36], index: 3, kind: input, shape index: {}]   ;;  %s816_s4 = inlined_call_operand.hbm [shape: f32[32,36], index: 4, kind: input, shape index: {}]   ;;  %s817_s5 = inlined_call_operand.vmem [shape: f32[1,36], index: 5, kind: input, shape index: {}]   ;;  %s818_s6 = inlined_call_operand.vmem [shape: f32[1,36], index: 6, kind: input, shape index: {}]   ;;  %s819_s7 = inlined_call_operand.vmem [shape: f32[1,36], index: 7, kind: input, shape index: {}]   ;;  %s820_s8 = inlined_call_operand.<no memory space> [shape: f32[1,1], index: 8, kind: input, shape index: {}]   ;;  %s821_s9 = inlined_call_operand.hbm [shape: f32[1,8], index: 9, kind: output, shape index: {}]  }
   0x1   :  { %16 = vsyncpa [#allocation7], 0 }
   0x2   :  { %17 = vsyncpa [#allocation10], 0 }
   0x3   :  { %18 = vsyncpa [#allocation5], 0  ;;  %s652_s30 = smov [#allocation6]   ;;  %s512_s13 = scalar_lea.hbm %s813_s1, 128 }
   0x4   :  { %s35_s10 = sshll.u32 %s652_s30, 4  ;;  %p513_p0 = scmp.ne.s32.totalorder %s813_s1, %s512_s13  ;;  %s36_s10 = int_to_ptr.vmem [resolvable:$true] %s35_s10 }
   0x5   :  { %p516_p1 = scmp.lt.u32.totalorder %s512_s13, %s813_s1 }
   0x7   :  { %p518_p2 = pnand %p516_p1, %p513_p0 }
   0x9   :  { %521 = shalt.err (!%p518_p2)
}
   0xa   :  { %s522_s18 = scalar_lea.vmem %s36_s10, 128  ;;  %p527_p4 = scmp.lt.s32.totalorder %s36_s10, %s36_s10 }
   0xb   :  { %p523_p3 = scmp.ne.s32.totalorder %s36_s10, %s522_s18  ;;  %p528_p5 = scmp.lt.s32.totalorder %s522_s18, %s522_s18 }
   0xd   :  { %p529_p6 = por %p528_p5, %p527_p4 }
   0xf   :  { %p530_p7 = pnand %p529_p6, %p523_p3 }
  0x11   :  { %533 = shalt.err (!%p530_p7)
}
  0x12   :  { %38 = dma.hbm_to_vmem [thread:$0]  %s813_s1, 128, %s36_s10, [#allocation7]  }
  0x13   :  { %s653_s21 = smov [#allocation9]   ;;  %s654_s23 = smov [#allocation3]  }
  0x14   :  { %s56_s22 = sshll.u32 %s653_s21, 4  ;;  %s25_s24 = sshll.u32 %s654_s23, 4  ;;  %s57_s22 = int_to_ptr.vmem [resolvable:$true] %s56_s22  ;;  %s26_s24 = int_to_ptr.vmem [resolvable:$true] %s25_s24 }
  0x15   :  { %s534_s27 = scalar_lea.hbm %s815_s3, 512 }
  0x16   :  { %p535_p8 = scmp.ne.s32.totalorder %s815_s3, %s534_s27  ;;  %p538_p9 = scmp.lt.u32.totalorder %s534_s27, %s815_s3 }
  0x18   :  { %p540_p10 = pnand %p538_p9, %p535_p8 }
  0x1a   :  { %543 = shalt.err (!%p540_p10)
}
  0x1b   :  { %s544_s1 = scalar_lea.vmem %s57_s22, 512  ;;  %p549_p12 = scmp.lt.s32.totalorder %s57_s22, %s57_s22 }
  0x1c   :  { %p545_p11 = scmp.ne.s32.totalorder %s57_s22, %s544_s1  ;;  %p550_p13 = scmp.lt.s32.totalorder %s544_s1, %s544_s1 }
  0x1e   :  { %p551_p0 = por %p550_p13, %p549_p12 }
  0x20   :  { %p552_p1 = pnand %p551_p0, %p545_p11 }
  0x22   :  { %555 = shalt.err (!%p552_p1)
}
  0x23   :  { %s655_s10 = smov 128   ;;  %s656_s12 = smov 8  }
  0x24   :  { %62 = dma.hbm_to_vmem [thread:$0]  %s815_s3, 512, %s57_s22, [#allocation10], %s655_s10, %s655_s10, %s656_s12  }
  0x25   :  { %s556_s17 = scalar_lea.hbm %s812_s0, 128 }
  0x26   :  { %p557_p2 = scmp.ne.s32.totalorder %s812_s0, %s556_s17  ;;  %p560_p3 = scmp.lt.u32.totalorder %s556_s17, %s812_s0 }
  0x28   :  { %p562_p4 = pnand %p560_p3, %p557_p2 }
  0x2a   :  { %565 = shalt.err (!%p562_p4)
}
  0x2b   :  { %s566_s23 = scalar_lea.vmem %s26_s24, 128  ;;  %p571_p6 = scmp.lt.s32.totalorder %s26_s24, %s26_s24 }
  0x2c   :  { %p567_p5 = scmp.ne.s32.totalorder %s26_s24, %s566_s23  ;;  %p572_p7 = scmp.lt.s32.totalorder %s566_s23, %s566_s23 }
  0x2e   :  { %p573_p8 = por %p572_p7, %p571_p6 }
  0x30   :  { %p574_p9 = pnand %p573_p8, %p567_p5 }
  0x32   :  { %577 = shalt.err (!%p574_p9)
}
  0x33   :  { %28 = dma.hbm_to_vmem [thread:$0]  %s812_s0, 128, %s26_s24, [#allocation4]  }
  0x34   :  { %s657_s25 = smov [#allocation8]   ;;  %s658_s27 = smov [#allocation11]  }
  0x35   :  { %s44_s26 = sshll.u32 %s657_s25, 4  ;;  %s68_s28 = sshll.u32 %s658_s27, 4  ;;  %s45_s26 = int_to_ptr.vmem [resolvable:$true] %s44_s26  ;;  %s69_s28 = int_to_ptr.vmem [resolvable:$true] %s68_s28 }
  0x36   :  { %s578_s11 = scalar_lea.hbm %s814_s2, 512 }
  0x37   :  { %p579_p10 = scmp.ne.s32.totalorder %s814_s2, %s578_s11  ;;  %p582_p11 = scmp.lt.u32.totalorder %s578_s11, %s814_s2 }
  0x39   :  { %p584_p12 = pnand %p582_p11, %p579_p10 }
  0x3b   :  { %587 = shalt.err (!%p584_p12)
}
  0x3c   :  { %s588_s0 = scalar_lea.vmem %s45_s26, 512  ;;  %p593_p0 = scmp.lt.s32.totalorder %s45_s26, %s45_s26 }
  0x3d   :  { %p589_p13 = scmp.ne.s32.totalorder %s45_s26, %s588_s0  ;;  %p594_p1 = scmp.lt.s32.totalorder %s588_s0, %s588_s0 }
  0x3f   :  { %p595_p2 = por %p594_p1, %p593_p0 }
  0x41   :  { %p596_p3 = pnand %p595_p2, %p589_p13 }
  0x43   :  { %599 = shalt.err (!%p596_p3)
}
  0x44   :  { %50 = dma.hbm_to_vmem [thread:$0]  %s814_s2, 512, %s45_s26, [#allocation7], %s655_s10, %s655_s10, %s656_s12  }
  0x45   :  { %s600_s19 = scalar_lea.hbm %s816_s4, 512 }
  0x46   :  { %p601_p4 = scmp.ne.s32.totalorder %s816_s4, %s600_s19  ;;  %p604_p5 = scmp.lt.u32.totalorder %s600_s19, %s816_s4 }
  0x48   :  { %p606_p6 = pnand %p604_p5, %p601_p4 }
  0x4a   :  { %609 = shalt.err (!%p606_p6)
}
  0x4b   :  { %s610_s22 = scalar_lea.vmem %s69_s28, 512  ;;  %p615_p8 = scmp.lt.s32.totalorder %s69_s28, %s69_s28 }
  0x4c   :  { %p611_p7 = scmp.ne.s32.totalorder %s69_s28, %s610_s22  ;;  %p616_p9 = scmp.lt.s32.totalorder %s610_s22, %s610_s22 }
  0x4e   :  { %p617_p10 = por %p616_p9, %p615_p8 }
  0x50   :  { %p618_p11 = pnand %p617_p10, %p611_p7 }
  0x52   :  { %621 = shalt.err (!%p618_p11)
}
  0x53   :  { %74 = dma.hbm_to_vmem [thread:$0]  %s816_s4, 512, %s69_s28, [#allocation10], %s655_s10, %s655_s10, %s656_s12  }
  0x54   :  { %644 = dma.done.wait [#allocation4], 128  }
  0x55   :  { %645 = vsyncadd [#allocation4], 4294967168 }
  0x56   :  { %646 = dma.done.wait [#allocation7], 640  }
  0x57   :  { %647 = vsyncadd [#allocation7], 4294966656 }
  0x58   :  { %648 = dma.done.wait [#allocation10], 1024  }
  0x59   :  { %649 = vsyncadd [#allocation10], 4294966272  ;;  %v659_v0 = vmov 0.0|0.0   ;;  %vm660_vm0 = vmmov 0   ;;  %v661_v1 = vmov 0.0   ;;  %v105_v2 = vld [vmem:[#allocation9] sm:$0xff] }
  0x5a   :  { %477 = vmatprep.subr.bf16.mxu0 %v659_v0  ;;  %483 = vmatprep.subr.bf16.mxu1 %v659_v0  ;;  %v106_v3 = vld [vmem:[#allocation9 + $0x8] sm:$0xff]  ;;  %v101_v4 = vld [vmem:[#allocation8] sm:$0xff]  ;;  %v107_v7 = vld [vmem:[#allocation9 + $0x10] sm:$0xff]  ;;  %vm109_vm1 = vcmask 261120   ;;  %vm342_vm2 = vcmask 293888   ;;  %vm403_vm3 = vcmask 57344  }
  0x5b   :  { %452 = vmatprep.mubr.msk.f32.mxu0 %vm660_vm0, %v661_v1  ;;  %463 = vmatprep.mubr.msk.f32.mxu1 %vm660_vm0, %v661_v1  ;;  %v478_v5 = vpack.c.bf16 %v106_v3, %v105_v2  ;;  %v102_v6 = vld [vmem:[#allocation8 + $0x8] sm:$0xff]  ;;  %v108_v8 = vld [vmem:[#allocation9 + $0x18] sm:$0xff]  ;;  %v103_v10 = vld [vmem:[#allocation8 + $0x10] sm:$0xff]  ;;  %v396_v2 = vlaneseq }
  0x5c   :  { %v484_v9 = vpack.c.bf16 %v102_v6, %v101_v4  ;;  %v104_v11 = vld [vmem:[#allocation8 + $0x18] sm:$0xff]  ;;  %v481_v12 = vpack.c.bf16 %v108_v8, %v107_v7  ;;  %v98_v13 = vld [vmem:[#allocation3] sm:$0xff]  ;;  %v256_v16 = vld [vmem:[#allocation11] sm:$0xff] }
  0x5d   :  { %479 = vmatpush3.bf16.msra.mxu0 %v478_v5  ;;  %v99_v14 = vld [vmem:[#allocation6] sm:$0xff]  ;;  %v487_v15 = vpack.c.bf16 %v104_v11, %v103_v10  ;;  %v257_v17 = vld [vmem:[#allocation11 + $0x8] sm:$0xff]  ;;  %v258_v20 = vld [vmem:[#allocation11 + $0x10] sm:$0xff]  ;;  %v397_v3 = vand.u32 127, %v396_v2  ;;  %v399_v4 = vshrl.u32 %v396_v2, 7  ;;  %v393_v5 = vstv %s820_s8 }
  0x5e   :  { %485 = vmatpush3.bf16.msra.mxu1 %v484_v9  ;;  %480 = vmatprep.subr.bf16.mxu0 %v659_v0  ;;  %v100_v18 = vmul.f32 %v99_v14, %v98_v13  ;;  %v490_v19 = vpack.c.bf16 %v257_v17, %v256_v16  ;;  %v259_v21 = vld [vmem:[#allocation11 + $0x18] sm:$0xff]  ;;  %v425_v29 = vld [vmem:[%s817_s5] ss:$0 sm:$0xff] }
  0x5f   :  { %486 = vmatprep.subr.bf16.mxu1 %v659_v0  ;;  %v493_v22 = vpack.c.bf16 %v259_v21, %v258_v20  ;;  %v427_v58 = vld [vmem:[%s818_s6] ss:$0 sm:$0xff]  ;;  %v400_v6 = vsub.s32 %v397_v3, %v399_v4  ;;  %s662_s6 = smov [#allocation12]  }
  0x60   :  { %v428_v62 = vld [vmem:[%s819_s7] ss:$0 sm:$0xff]  ;;  %s411_s30 = sshll.u32 %s662_s6, 4  ;;  %s412_s30 = int_to_ptr.vmem [resolvable:$true] %s411_s30 }
  0x61   :  { %482 = vmatpush3.bf16.msra.mxu0 %v481_v12  ;;  %s622_s7 = scalar_lea.vmem %s412_s30, 16  ;;  %s626_s11 = scalar_lea.vmem %s412_s30, 32 }
  0x62   :  { %488 = vmatpush3.bf16.msra.mxu1 %v487_v15  ;;  %489 = vmatprep.subr.bf16.mxu0 %v659_v0  ;;  %p623_p12 = scmp.ne.s32.totalorder %s412_s30, %s622_s7  ;;  %p627_p13 = scmp.lt.s32.totalorder %s412_s30, %s412_s30 }
  0x63   :  { %p628_p0 = scmp.lt.s32.totalorder %s626_s11, %s622_s7 }
  0x64   :  { %453 = vmatmul.mubr.msk.f32.vlgmr.msra.gmra.mrb[0].mxu0 %vm109_vm1, %v100_v18 }
  0x65   :  { %464 = vmatmul.mubr.msk.f32.vlgmr.msra.gmra.mrb[0].mxu1 %vm109_vm1, %v98_v13  ;;  %491 = vmatpush3.bf16.msra.mxu0 %v490_v19  ;;  %p629_p1 = por %p628_p0, %p627_p13 }
  0x66   :  { %492 = vmatprep.subr.bf16.mxu0 %v659_v0  ;;  %474 = vmatprep.mubr.msk.f32.mxu0 %vm660_vm0, %v661_v1 }
  0x67   :  { %p630_p2 = pnand %p629_p1, %p623_p12 }
  0x69   :  { %494 = vmatpush3.bf16.msra.mxu0 %v493_v22 }
  0x6c   :  { %475 = vmatmul.mubr.msk.f32.vlgmr.msra.gmra.mrb[2].mxu0 %vm109_vm1, %v99_v14 }
 0x137   :  { %v179_v23 = vpop.f32.mrb[0].mxu0 }
 0x138   :  { %v454_v24 = vpop.f32.mrb[1].mxu0  ;;  %v252_v25 = vpop.f32.mrb[0].mxu1 }
 0x139   :  { %v253_v26 = vadd.f32 %v252_v25, %v179_v23  ;;  %v465_v27 = vpop.f32.mrb[1].mxu1 }
 0x13f   :  { %v329_v28 = vpop.f32.mrb[2].mxu0 }
 0x140   :  { %v333_v30 = vadd.f32 %v329_v28, %v253_v26  ;;  %v476_v31 = vpop.f32.mrb[3].mxu0 }
 0x142   :  { %v341_v32 = vadd.f32 %v425_v29, %v333_v30 }
 0x144   :  { %v343_v33 = vsel %vm342_vm2, %v341_v32, 0.0 }
 0x145   :  { %v344_v34 = vrot.slane %v343_v33, 4 }
 0x147   :  { %v345_v35 = vadd.f32 %v344_v34, %v343_v33 }
 0x149   :  { %v346_v36 = vrot.slane %v345_v35, 2 }
 0x14b   :  { %v347_v37 = vadd.f32 %v346_v36, %v345_v35 }
 0x14d   :  { %v348_v38 = vrot.slane %v347_v37, 1 }
 0x14f   :  { %v349_v39 = vadd.f32 %v348_v38, %v347_v37 }
 0x151   :  { %v350_v40 = vmul.f32 0.125, %v349_v39 }
 0x153   :  { %v351_v41 = vsub.f32 %v341_v32, %v350_v40 }
 0x155   :  { %v352_v42 = vmul.f32 %v351_v41, %v351_v41 }
 0x157   :  { %v353_v43 = vsel %vm342_vm2, %v352_v42, 0.0 }
 0x158   :  { %v354_v44 = vrot.slane %v353_v43, 4 }
 0x15a   :  { %v355_v45 = vadd.f32 %v354_v44, %v353_v43 }
 0x15c   :  { %v356_v46 = vrot.slane %v355_v45, 2 }
 0x15e   :  { %v357_v47 = vadd.f32 %v356_v46, %v355_v45 }
 0x160   :  { %v358_v48 = vrot.slane %v357_v47, 1 }
 0x162   :  { %v359_v49 = vadd.f32 %v358_v48, %v357_v47 }
 0x164   :  { %v360_v50 = vmul.f32 0.125, %v359_v49 }
 0x166   :  { %v361_v51 = vadd.f32 1e-08, %v360_v50 }
 0x168   :  { %506 = vrsqrt.f32 %v361_v51 }
 0x172   :  { %v507_v52 = vpop.eup %506 }
 0x173   :  { %v363_v53 = vmul.f32 %v507_v52, %v351_v41 }
 0x175   :  { %v426_v54 = vmul.f32 -1.442695, %v363_v53 }
 0x177   :  { %508 = vpow2.f32 %v426_v54 }
 0x181   :  { %v509_v55 = vpop.eup %508 }
 0x182   :  { %v367_v56 = vadd.f32 1.0, %v509_v55 }
 0x184   :  { %510 = vrcp.f32 %v367_v56 }
 0x18e   :  { %v511_v57 = vpop.eup %510 }
 0x18f   :  { %v371_v59 = vsub.f32 1.0, %v511_v57 }
 0x191   :  { %v378_v60 = vmul.f32 %v427_v58, %v371_v59 }
 0x193   :  { %v379_v61 = vadd.f32 %v511_v57, %v378_v60 }
 0x195   :  { %v380_v63 = vmul.f32 %v379_v61, %v341_v32 }
 0x197   :  { %v388_v0 = vmul.f32 %v428_v62, %v380_v63 }
 0x199   :  { %v389_v1 = vsel %vm342_vm2, %v388_v0, 0.0 }
 0x19a   :  { %390 = vadd.xlane.f32.xlu0 %v389_v1 }
 0x227   :  { %v391_v7 = vpop.xlane.xlu0 %390 }
 0x228   :  { %v394_v8 = vadd.f32 %v393_v5, %v391_v7 }
 0x22a   :  { %v401_v9 = vrot.slane %v394_v8, %v400_v6 }
 0x22c   :  { %404 = vst.msk [vmem:[#allocation12] sm:$0x1] %vm403_vm3, %v401_v9 }
 0x22d   :  { %633 = shalt.err (!%p630_p2)
}
 0x22e   :  { %s634_s8 = scalar_lea.hbm %s821_s9, 16 }
 0x22f   :  { %p635_p3 = scmp.ne.s32.totalorder %s821_s9, %s634_s8  ;;  %p638_p4 = scmp.lt.u32.totalorder %s634_s8, %s821_s9 }
 0x231   :  { %p640_p5 = pnand %p638_p4, %p635_p3 }
 0x233   :  { %643 = shalt.err (!%p640_p5)
}
 0x234   :  { %414 = dma.vmem_to_hbm [thread:$0]  %s412_s30, 16, %s821_s9, [#allocation5]  }
 0x235   :  { %650 = dma.done.wait [#allocation5], 16  }
 0x236   :  { %651 = vsyncadd [#allocation5], 4294967280 }
 0x237   :  { %418 = vsyncpa [#allocation4], 1 }
 0x238   :  { %419 = vsyncpa [#allocation7], 1 }
 0x239   :  { %420 = vsyncpa [#allocation10], 1 }
 0x23a   :  { %421 = vsyncpa [#allocation5], 1 }

</bundles_post_ra>
